<compile_context>
chip_gen: v6e
topology: v6e:2x2x1
jax: 0.10.0
libtpu: 0.0.40
codegen_flags: <defaults>
</compile_context>

<pallas_src>
import jax
import jax.numpy as jnp
from jax.experimental import pallas as pl
from jax.experimental.pallas import tpu as pltpu


def _round_up(x, m):
    return (x + m - 1) // m * m


def _make_kernel(NB, C_in, kH, kW, Wp, L):
    """One batch-block per grid step; per image: im2col stack + one matmul."""
    taps = [kh * Wp + kw for kh in range(kH) for kw in range(kW)]

    def kernel(x_ref, w_ref, b_ref, o_ref, xs_ref):
        # x_ref : (NB, C_in, Lin)  bf16  padded input, spatial flattened
        # w_ref : (C_tot, K)       bf16  taps fused into one contraction dim
        # b_ref : (C_tot, 1)       f32
        # o_ref : (NB, C_tot, L)   bf16  L = H*Wp (junk cols stripped outside)
        # xs_ref: (K, L)           bf16  im2col scratch (sublane-stacked taps)
        w = w_ref[...]
        bvec = b_ref[...]
        for n in range(NB):
            # Build the shifted operand once (one lane-offset read per tap,
            # written into scratch), then a single K-fused MXU matmul.
            for t, d in enumerate(taps):
                xs_ref[t * C_in:(t + 1) * C_in, :] = x_ref[n, :, d:d + L]
            acc = jnp.dot(w, xs_ref[...], preferred_element_type=jnp.float32)
            o_ref[n] = (acc + bvec).astype(o_ref.dtype)

    return kernel


def _pick_batch_block(N, per_image_bytes, budget_bytes):
    """Largest divisor of N whose double-buffered blocks fit the budget."""
    nb = 1
    for cand in range(1, N + 1):
        if N % cand == 0 and cand * per_image_bytes <= budget_bytes:
            nb = cand
    return nb


def conv_shuffle_forward(x, weight, bias, *, upscale_factor=2,
                         compute_dtype=jnp.bfloat16,
                         out_dtype=jnp.bfloat16):
    """ConvShuffle.forward: Conv2d(padding='same') + pixel_shuffle.

    x:      (N, C_in, H, W)             NCHW (PyTorch layout)
    weight: (C_out*r^2, C_in, kH, kW)   PyTorch Conv2d weight
    bias:   (C_out*r^2,)
    returns (N, C_out, H*r, W*r) in out_dtype.
    """
    N, C_in, H, W = x.shape
    C_tot, C_in_w, kH, kW = weight.shape
    assert C_in_w == C_in
    r = upscale_factor
    assert C_tot % (r * r) == 0
    C_out = C_tot // (r * r)

    # PyTorch 'same' padding (stride=1, dilation=1, zeros): left = total // 2.
    ph, pw = kH - 1, kW - 1
    ph_l, pw_l = ph // 2, pw // 2
    Hp, Wp = H + ph, W + pw

    L = H * Wp                          # flat conv-output length per image
    K = kH * kW * C_in                  # fused contraction depth
    d_max = (kH - 1) * Wp + (kW - 1)    # deepest tap shift
    # OOB fix + lane-friendly layout: every tap slice [d, d+L) must be in
    # bounds -> need d_max + L columns; round up to a multiple of 128.
    Lin = _round_up(d_max + L, 128)

    cbytes = jnp.dtype(compute_dtype).itemsize
    obytes = jnp.dtype(out_dtype).itemsize

    # Pad spatially, flatten spatial lane-major, zero-extend to Lin, cast.
    xp = jnp.pad(x, ((0, 0), (0, 0), (ph_l, ph - ph_l), (pw_l, pw - pw_l)))
    xf = xp.reshape(N, C_in, Hp * Wp)
    xf = jnp.pad(xf, ((0, 0), (0, 0), (0, Lin - Hp * Wp))).astype(compute_dtype)

    # Weights: (C_tot, C_in, kH, kW) -> (C_tot, kH*kW*C_in), tap-major K so it
    # matches the scratch stacking order (rows [t*C_in, (t+1)*C_in) = tap t).
    wk = jnp.transpose(weight, (0, 2, 3, 1)).reshape(C_tot, K)
    wk = wk.astype(compute_dtype)
    b2 = bias.reshape(C_tot, 1).astype(jnp.float32)

    # Fold a block of NB images into each grid step (double-buffered in/out
    # blocks sized against a VMEM budget).  For small N this collapses the
    # grid into one fat step instead of 1-2 underfed steps.
    per_image_bytes = 2 * (C_in * Lin * cbytes) + 2 * (C_tot * L * obytes)
    NB = _pick_batch_block(N, per_image_bytes, budget_bytes=8 << 20)
    G = N // NB

    needed = (NB * per_image_bytes + C_tot * K * cbytes + C_tot * 4
              + K * L * cbytes)
    vmem_limit = int(min(64 << 20, max(2 * needed, 32 << 20)))

    kernel = _make_kernel(NB, C_in, kH, kW, Wp, L)

    cost = pl.CostEstimate(
        flops=2 * N * C_tot * K * L,
        transcendentals=0,
        bytes_accessed=(xf.size * cbytes + wk.size * cbytes + b2.size * 4
                        + N * C_tot * L * obytes),
    )

    y = pl.pallas_call(
        kernel,
        out_shape=jax.ShapeDtypeStruct((N, C_tot, L), out_dtype),
        grid_spec=pltpu.PrefetchScalarGridSpec(
            num_scalar_prefetch=0,
            grid=(G,),
            in_specs=[
                pl.BlockSpec((NB, C_in, Lin), lambda b: (b, 0, 0)),
                pl.BlockSpec((C_tot, K), lambda b: (0, 0)),
                pl.BlockSpec((C_tot, 1), lambda b: (0, 0)),
            ],
            out_specs=pl.BlockSpec((NB, C_tot, L), lambda b: (b, 0, 0)),
            scratch_shapes=[pltpu.VMEM((K, L), compute_dtype)],
        ),
        compiler_params=pltpu.CompilerParams(
            dimension_semantics=("parallel",),
            vmem_limit_bytes=vmem_limit),
        cost_estimate=cost,
    )(xf, wk, b2)

    # Strip the kW-1 junk columns (conv evaluated at pad-overrun positions);
    # the reshape is free and the strip fuses with the pixel-shuffle copy.
    y = y.reshape(N, C_tot, H, Wp)[:, :, :, :W]

    # pixel_shuffle: out[n, c, h*r+i, w*r+j] = y[n, c*r^2 + i*r + j, h, w].
    y = y.reshape(N, C_out, r, r, H, W).transpose(0, 1, 4, 2, 5, 3)
    return y.reshape(N, C_out, H * r, W * r)


def _reference(x, weight, bias, r):
    """Pure-JAX f32 reference: XLA conv (NCHW) + bias + pixel_shuffle."""
    kH, kW = weight.shape[2], weight.shape[3]
    ph, pw = kH - 1, kW - 1
    pad = ((ph // 2, ph - ph // 2), (pw // 2, pw - pw // 2))
    y = jax.lax.conv_general_dilated(
        x, weight, window_strides=(1, 1), padding=pad,
        dimension_numbers=("NCHW", "OIHW", "NCHW"))
    y = y + bias.reshape(1, -1, 1, 1)
    N, C_tot, H, W = y.shape
    C_out = C_tot // (r * r)
    y = y.reshape(N, C_out, r, r, H, W).transpose(0, 1, 4, 2, 5, 3)
    return y.reshape(N, C_out, H * r, W * r)


if __name__ == "__main__":
    key = jax.random.PRNGKey(0)
    k1, k2, k3 = jax.random.split(key, 3)

    # Small shapes consistent with the module's forward.
    N, C_in, H, W = 2, 4, 16, 16
    C_out, r, ksz = 4, 2, 3
    C_tot = C_out * r * r

    x = jax.random.normal(k1, (N, C_in, H, W), jnp.float32)

    # Deterministic Conv2d-style init (uniform in +/- 1/sqrt(fan_in)).
    fan_in = C_in * ksz * ksz
    bound = 1.0 / (fan_in ** 0.5)
    weight = jax.random.uniform(k2, (C_tot, C_in, ksz, ksz), jnp.float32,
                                minval=-bound, maxval=bound)
    bias = jax.random.uniform(k3, (C_tot,), jnp.float32,
                              minval=-bound, maxval=bound)

    out = conv_shuffle_forward(x, weight, bias, upscale_factor=r)
    out = jax.block_until_ready(out)
    assert out.shape == (N, C_out, H * r, W * r), out.shape

    # Dtype policy: bf16 inputs/weights, f32 accumulation, bf16 store.
    # Compare against an f32 reference evaluated on the same bf16-rounded
    # inputs so the check isolates kernel correctness from input rounding.
    xq = x.astype(jnp.bfloat16).astype(jnp.float32)
    wq = weight.astype(jnp.bfloat16).astype(jnp.float32)
    ref = jax.block_until_ready(_reference(xq, wq, bias, r))

    outf = out.astype(jnp.float32)
    max_err = float(jnp.max(jnp.abs(outf - ref)))
    assert bool(jnp.allclose(outf, ref, rtol=1e-2, atol=1e-2)), max_err

    print("KERNEL_OK")
</pallas_src>

<mosaic_0001>
module attributes {stable_mosaic.version = 11 : i64} {
  func.func @kernel(%arg0: i32, %arg1: memref<2x4x384xbf16, #tpu.memory_space<vmem>>, %arg2: memref<16x36xbf16, #tpu.memory_space<vmem>>, %arg3: memref<16x1xf32, #tpu.memory_space<vmem>>, %arg4: memref<2x16x288xbf16, #tpu.memory_space<vmem>>, %arg5: memref<36x288xbf16, #tpu.memory_space<vmem>>) attributes {dimension_semantics = [#tpu.dimension_semantics<parallel>], iteration_bounds = array<i64: 1>, scalar_prefetch = 0 : i64, scratch_operands = 1 : i64, tpu.core_type = #tpu.core_type<tc>, window_params = [{transform_indices = @transform_0, window_bounds = array<i64: 2, 4, 384>}, {pipeline_mode = #tpu.pipeline_mode<synchronous>, transform_indices = @transform_1, window_bounds = array<i64: 16, 36>}, {pipeline_mode = #tpu.pipeline_mode<synchronous>, transform_indices = @transform_2, window_bounds = array<i64: 16, 1>}, {transform_indices = @transform_3, window_bounds = array<i64: 2, 16, 288>}]} {
    %c0 = arith.constant 0 : index
    %c0_0 = arith.constant 0 : index
    %0 = vector.load %arg2[%c0, %c0_0] : memref<16x36xbf16, #tpu.memory_space<vmem>>, vector<16x36xbf16>
    %c0_1 = arith.constant 0 : index
    %c0_2 = arith.constant 0 : index
    %1 = vector.load %arg3[%c0_1, %c0_2] : memref<16x1xf32, #tpu.memory_space<vmem>>, vector<16x1xf32>
    %c0_3 = arith.constant 0 : index
    %c0_4 = arith.constant 0 : index
    %c0_5 = arith.constant 0 : index
    %2 = vector.load %arg1[%c0_3, %c0_4, %c0_5] : memref<2x4x384xbf16, #tpu.memory_space<vmem>>, vector<1x4x288xbf16>
    %3 = vector.shape_cast %2 : vector<1x4x288xbf16> to vector<4x288xbf16>
    %c0_6 = arith.constant 0 : index
    %c0_7 = arith.constant 0 : index
    %4 = vector.load %arg5[%c0_6, %c0_7] : memref<36x288xbf16, #tpu.memory_space<vmem>>, vector<4x288xbf16>
    tpu.vector_store %arg5[%c0_6, %c0_7], %3 {strides = array<i32>} : memref<36x288xbf16, #tpu.memory_space<vmem>>, vector<4x288xbf16>,
    %c0_8 = arith.constant 0 : index
    %c0_9 = arith.constant 0 : index
    %c1 = arith.constant 1 : index
    %5 = vector.load %arg1[%c0_8, %c0_9, %c1] : memref<2x4x384xbf16, #tpu.memory_space<vmem>>, vector<1x4x288xbf16>
    %6 = vector.shape_cast %5 : vector<1x4x288xbf16> to vector<4x288xbf16>
    %c4 = arith.constant 4 : index
    %c0_10 = arith.constant 0 : index
    %7 = vector.load %arg5[%c4, %c0_10] : memref<36x288xbf16, #tpu.memory_space<vmem>>, vector<4x288xbf16>
    tpu.vector_store %arg5[%c4, %c0_10], %6 {strides = array<i32>} : memref<36x288xbf16, #tpu.memory_space<vmem>>, vector<4x288xbf16>,
    %c0_11 = arith.constant 0 : index
    %c0_12 = arith.constant 0 : index
    %c2 = arith.constant 2 : index
    %8 = vector.load %arg1[%c0_11, %c0_12, %c2] : memref<2x4x384xbf16, #tpu.memory_space<vmem>>, vector<1x4x288xbf16>
    %9 = vector.shape_cast %8 : vector<1x4x288xbf16> to vector<4x288xbf16>
    %c8 = arith.constant 8 : index
    %c0_13 = arith.constant 0 : index
    %10 = vector.load %arg5[%c8, %c0_13] : memref<36x288xbf16, #tpu.memory_space<vmem>>, vector<4x288xbf16>
    tpu.vector_store %arg5[%c8, %c0_13], %9 {strides = array<i32>} : memref<36x288xbf16, #tpu.memory_space<vmem>>, vector<4x288xbf16>,
    %c0_14 = arith.constant 0 : index
    %c0_15 = arith.constant 0 : index
    %c18 = arith.constant 18 : index
    %11 = vector.load %arg1[%c0_14, %c0_15, %c18] : memref<2x4x384xbf16, #tpu.memory_space<vmem>>, vector<1x4x288xbf16>
    %12 = vector.shape_cast %11 : vector<1x4x288xbf16> to vector<4x288xbf16>
    %c12 = arith.constant 12 : index
    %c0_16 = arith.constant 0 : index
    %13 = vector.load %arg5[%c12, %c0_16] : memref<36x288xbf16, #tpu.memory_space<vmem>>, vector<4x288xbf16>
    tpu.vector_store %arg5[%c12, %c0_16], %12 {strides = array<i32>} : memref<36x288xbf16, #tpu.memory_space<vmem>>, vector<4x288xbf16>,
    %c0_17 = arith.constant 0 : index
    %c0_18 = arith.constant 0 : index
    %c19 = arith.constant 19 : index
    %14 = vector.load %arg1[%c0_17, %c0_18, %c19] : memref<2x4x384xbf16, #tpu.memory_space<vmem>>, vector<1x4x288xbf16>
    %15 = vector.shape_cast %14 : vector<1x4x288xbf16> to vector<4x288xbf16>
    %c16 = arith.constant 16 : index
    %c0_19 = arith.constant 0 : index
    %16 = vector.load %arg5[%c16, %c0_19] : memref<36x288xbf16, #tpu.memory_space<vmem>>, vector<4x288xbf16>
    tpu.vector_store %arg5[%c16, %c0_19], %15 {strides = array<i32>} : memref<36x288xbf16, #tpu.memory_space<vmem>>, vector<4x288xbf16>,
    %c0_20 = arith.constant 0 : index
    %c0_21 = arith.constant 0 : index
    %c20 = arith.constant 20 : index
    %17 = vector.load %arg1[%c0_20, %c0_21, %c20] : memref<2x4x384xbf16, #tpu.memory_space<vmem>>, vector<1x4x288xbf16>
    %18 = vector.shape_cast %17 : vector<1x4x288xbf16> to vector<4x288xbf16>
    %c20_22 = arith.constant 20 : index
    %c0_23 = arith.constant 0 : index
    %19 = vector.load %arg5[%c20_22, %c0_23] : memref<36x288xbf16, #tpu.memory_space<vmem>>, vector<4x288xbf16>
    tpu.vector_store %arg5[%c20_22, %c0_23], %18 {strides = array<i32>} : memref<36x288xbf16, #tpu.memory_space<vmem>>, vector<4x288xbf16>,
    %c0_24 = arith.constant 0 : index
    %c0_25 = arith.constant 0 : index
    %c36 = arith.constant 36 : index
    %20 = vector.load %arg1[%c0_24, %c0_25, %c36] : memref<2x4x384xbf16, #tpu.memory_space<vmem>>, vector<1x4x288xbf16>
    %21 = vector.shape_cast %20 : vector<1x4x288xbf16> to vector<4x288xbf16>
    %c24 = arith.constant 24 : index
    %c0_26 = arith.constant 0 : index
    %22 = vector.load %arg5[%c24, %c0_26] : memref<36x288xbf16, #tpu.memory_space<vmem>>, vector<4x288xbf16>
    tpu.vector_store %arg5[%c24, %c0_26], %21 {strides = array<i32>} : memref<36x288xbf16, #tpu.memory_space<vmem>>, vector<4x288xbf16>,
    %c0_27 = arith.constant 0 : index
    %c0_28 = arith.constant 0 : index
    %c37 = arith.constant 37 : index
    %23 = vector.load %arg1[%c0_27, %c0_28, %c37] : memref<2x4x384xbf16, #tpu.memory_space<vmem>>, vector<1x4x288xbf16>
    %24 = vector.shape_cast %23 : vector<1x4x288xbf16> to vector<4x288xbf16>
    %c28 = arith.constant 28 : index
    %c0_29 = arith.constant 0 : index
    %25 = vector.load %arg5[%c28, %c0_29] : memref<36x288xbf16, #tpu.memory_space<vmem>>, vector<4x288xbf16>
    tpu.vector_store %arg5[%c28, %c0_29], %24 {strides = array<i32>} : memref<36x288xbf16, #tpu.memory_space<vmem>>, vector<4x288xbf16>,
    %c0_30 = arith.constant 0 : index
    %c0_31 = arith.constant 0 : index
    %c38 = arith.constant 38 : index
    %26 = vector.load %arg1[%c0_30, %c0_31, %c38] : memref<2x4x384xbf16, #tpu.memory_space<vmem>>, vector<1x4x288xbf16>
    %27 = vector.shape_cast %26 : vector<1x4x288xbf16> to vector<4x288xbf16>
    %c32 = arith.constant 32 : index
    %c0_32 = arith.constant 0 : index
    %28 = vector.load %arg5[%c32, %c0_32] : memref<36x288xbf16, #tpu.memory_space<vmem>>, vector<4x288xbf16>
    tpu.vector_store %arg5[%c32, %c0_32], %27 {strides = array<i32>} : memref<36x288xbf16, #tpu.memory_space<vmem>>, vector<4x288xbf16>,
    %c0_33 = arith.constant 0 : index
    %c0_34 = arith.constant 0 : index
    %29 = vector.load %arg5[%c0_33, %c0_34] : memref<36x288xbf16, #tpu.memory_space<vmem>>, vector<36x288xbf16>
    %cst = arith.constant dense<0.000000e+00> : vector<16x288xf32>
    %30 = tpu.matmul %0, %29, %cst {dimension_numbers = #tpu.dot_dimension_numbers<[1], [0], [0], [1], [0, 0, 1, 1], [], []>} : vector<16x36xbf16>, vector<36x288xbf16>, vector<16x288xf32> -> vector<16x288xf32>
    %31 = vector.broadcast %1 : vector<16x1xf32> to vector<16x288xf32>
    %32 = arith.addf %30, %31 : vector<16x288xf32>
    %33 = arith.truncf %32 : vector<16x288xf32> to vector<16x288xbf16>
    %c0_35 = arith.constant 0 : index
    %c0_36 = arith.constant 0 : index
    %c0_37 = arith.constant 0 : index
    %34 = vector.load %arg4[%c0_35, %c0_36, %c0_37] : memref<2x16x288xbf16, #tpu.memory_space<vmem>>, vector<1x16x288xbf16>
    %35 = vector.shape_cast %34 : vector<1x16x288xbf16> to vector<16x288xbf16>
    %36 = vector.shape_cast %33 : vector<16x288xbf16> to vector<1x16x288xbf16>
    tpu.vector_store %arg4[%c0_35, %c0_36, %c0_37], %36 {strides = array<i32>} : memref<2x16x288xbf16, #tpu.memory_space<vmem>>, vector<1x16x288xbf16>,
    %c1_38 = arith.constant 1 : index
    %c0_39 = arith.constant 0 : index
    %c0_40 = arith.constant 0 : index
    %37 = vector.load %arg1[%c1_38, %c0_39, %c0_40] : memref<2x4x384xbf16, #tpu.memory_space<vmem>>, vector<1x4x288xbf16>
    %38 = vector.shape_cast %37 : vector<1x4x288xbf16> to vector<4x288xbf16>
    %c0_41 = arith.constant 0 : index
    %c0_42 = arith.constant 0 : index
    %39 = vector.load %arg5[%c0_41, %c0_42] : memref<36x288xbf16, #tpu.memory_space<vmem>>, vector<4x288xbf16>
    tpu.vector_store %arg5[%c0_41, %c0_42], %38 {strides = array<i32>} : memref<36x288xbf16, #tpu.memory_space<vmem>>, vector<4x288xbf16>,
    %c1_43 = arith.constant 1 : index
    %c0_44 = arith.constant 0 : index
    %c1_45 = arith.constant 1 : index
    %40 = vector.load %arg1[%c1_43, %c0_44, %c1_45] : memref<2x4x384xbf16, #tpu.memory_space<vmem>>, vector<1x4x288xbf16>
    %41 = vector.shape_cast %40 : vector<1x4x288xbf16> to vector<4x288xbf16>
    %c4_46 = arith.constant 4 : index
    %c0_47 = arith.constant 0 : index
    %42 = vector.load %arg5[%c4_46, %c0_47] : memref<36x288xbf16, #tpu.memory_space<vmem>>, vector<4x288xbf16>
    tpu.vector_store %arg5[%c4_46, %c0_47], %41 {strides = array<i32>} : memref<36x288xbf16, #tpu.memory_space<vmem>>, vector<4x288xbf16>,
    %c1_48 = arith.constant 1 : index
    %c0_49 = arith.constant 0 : index
    %c2_50 = arith.constant 2 : index
    %43 = vector.load %arg1[%c1_48, %c0_49, %c2_50] : memref<2x4x384xbf16, #tpu.memory_space<vmem>>, vector<1x4x288xbf16>
    %44 = vector.shape_cast %43 : vector<1x4x288xbf16> to vector<4x288xbf16>
    %c8_51 = arith.constant 8 : index
    %c0_52 = arith.constant 0 : index
    %45 = vector.load %arg5[%c8_51, %c0_52] : memref<36x288xbf16, #tpu.memory_space<vmem>>, vector<4x288xbf16>
    tpu.vector_store %arg5[%c8_51, %c0_52], %44 {strides = array<i32>} : memref<36x288xbf16, #tpu.memory_space<vmem>>, vector<4x288xbf16>,
    %c1_53 = arith.constant 1 : index
    %c0_54 = arith.constant 0 : index
    %c18_55 = arith.constant 18 : index
    %46 = vector.load %arg1[%c1_53, %c0_54, %c18_55] : memref<2x4x384xbf16, #tpu.memory_space<vmem>>, vector<1x4x288xbf16>
    %47 = vector.shape_cast %46 : vector<1x4x288xbf16> to vector<4x288xbf16>
    %c12_56 = arith.constant 12 : index
    %c0_57 = arith.constant 0 : index
    %48 = vector.load %arg5[%c12_56, %c0_57] : memref<36x288xbf16, #tpu.memory_space<vmem>>, vector<4x288xbf16>
    tpu.vector_store %arg5[%c12_56, %c0_57], %47 {strides = array<i32>} : memref<36x288xbf16, #tpu.memory_space<vmem>>, vector<4x288xbf16>,
    %c1_58 = arith.constant 1 : index
    %c0_59 = arith.constant 0 : index
    %c19_60 = arith.constant 19 : index
    %49 = vector.load %arg1[%c1_58, %c0_59, %c19_60] : memref<2x4x384xbf16, #tpu.memory_space<vmem>>, vector<1x4x288xbf16>
    %50 = vector.shape_cast %49 : vector<1x4x288xbf16> to vector<4x288xbf16>
    %c16_61 = arith.constant 16 : index
    %c0_62 = arith.constant 0 : index
    %51 = vector.load %arg5[%c16_61, %c0_62] : memref<36x288xbf16, #tpu.memory_space<vmem>>, vector<4x288xbf16>
    tpu.vector_store %arg5[%c16_61, %c0_62], %50 {strides = array<i32>} : memref<36x288xbf16, #tpu.memory_space<vmem>>, vector<4x288xbf16>,
    %c1_63 = arith.constant 1 : index
    %c0_64 = arith.constant 0 : index
    %c20_65 = arith.constant 20 : index
    %52 = vector.load %arg1[%c1_63, %c0_64, %c20_65] : memref<2x4x384xbf16, #tpu.memory_space<vmem>>, vector<1x4x288xbf16>
    %53 = vector.shape_cast %52 : vector<1x4x288xbf16> to vector<4x288xbf16>
    %c20_66 = arith.constant 20 : index
    %c0_67 = arith.constant 0 : index
    %54 = vector.load %arg5[%c20_66, %c0_67] : memref<36x288xbf16, #tpu.memory_space<vmem>>, vector<4x288xbf16>
    tpu.vector_store %arg5[%c20_66, %c0_67], %53 {strides = array<i32>} : memref<36x288xbf16, #tpu.memory_space<vmem>>, vector<4x288xbf16>,
    %c1_68 = arith.constant 1 : index
    %c0_69 = arith.constant 0 : index
    %c36_70 = arith.constant 36 : index
    %55 = vector.load %arg1[%c1_68, %c0_69, %c36_70] : memref<2x4x384xbf16, #tpu.memory_space<vmem>>, vector<1x4x288xbf16>
    %56 = vector.shape_cast %55 : vector<1x4x288xbf16> to vector<4x288xbf16>
    %c24_71 = arith.constant 24 : index
    %c0_72 = arith.constant 0 : index
    %57 = vector.load %arg5[%c24_71, %c0_72] : memref<36x288xbf16, #tpu.memory_space<vmem>>, vector<4x288xbf16>
    tpu.vector_store %arg5[%c24_71, %c0_72], %56 {strides = array<i32>} : memref<36x288xbf16, #tpu.memory_space<vmem>>, vector<4x288xbf16>,
    %c1_73 = arith.constant 1 : index
    %c0_74 = arith.constant 0 : index
    %c37_75 = arith.constant 37 : index
    %58 = vector.load %arg1[%c1_73, %c0_74, %c37_75] : memref<2x4x384xbf16, #tpu.memory_space<vmem>>, vector<1x4x288xbf16>
    %59 = vector.shape_cast %58 : vector<1x4x288xbf16> to vector<4x288xbf16>
    %c28_76 = arith.constant 28 : index
    %c0_77 = arith.constant 0 : index
    %60 = vector.load %arg5[%c28_76, %c0_77] : memref<36x288xbf16, #tpu.memory_space<vmem>>, vector<4x288xbf16>
    tpu.vector_store %arg5[%c28_76, %c0_77], %59 {strides = array<i32>} : memref<36x288xbf16, #tpu.memory_space<vmem>>, vector<4x288xbf16>,
    %c1_78 = arith.constant 1 : index
    %c0_79 = arith.constant 0 : index
    %c38_80 = arith.constant 38 : index
    %61 = vector.load %arg1[%c1_78, %c0_79, %c38_80] : memref<2x4x384xbf16, #tpu.memory_space<vmem>>, vector<1x4x288xbf16>
    %62 = vector.shape_cast %61 : vector<1x4x288xbf16> to vector<4x288xbf16>
    %c32_81 = arith.constant 32 : index
    %c0_82 = arith.constant 0 : index
    %63 = vector.load %arg5[%c32_81, %c0_82] : memref<36x288xbf16, #tpu.memory_space<vmem>>, vector<4x288xbf16>
    tpu.vector_store %arg5[%c32_81, %c0_82], %62 {strides = array<i32>} : memref<36x288xbf16, #tpu.memory_space<vmem>>, vector<4x288xbf16>,
    %c0_83 = arith.constant 0 : index
    %c0_84 = arith.constant 0 : index
    %64 = vector.load %arg5[%c0_83, %c0_84] : memref<36x288xbf16, #tpu.memory_space<vmem>>, vector<36x288xbf16>
    %cst_85 = arith.constant dense<0.000000e+00> : vector<16x288xf32>
    %65 = tpu.matmul %0, %64, %cst_85 {dimension_numbers = #tpu.dot_dimension_numbers<[1], [0], [0], [1], [0, 0, 1, 1], [], []>} : vector<16x36xbf16>, vector<36x288xbf16>, vector<16x288xf32> -> vector<16x288xf32>
    %66 = vector.broadcast %1 : vector<16x1xf32> to vector<16x288xf32>
    %67 = arith.addf %65, %66 : vector<16x288xf32>
    %68 = arith.truncf %67 : vector<16x288xf32> to vector<16x288xbf16>
    %c1_86 = arith.constant 1 : index
    %c0_87 = arith.constant 0 : index
    %c0_88 = arith.constant 0 : index
    %69 = vector.load %arg4[%c1_86, %c0_87, %c0_88] : memref<2x16x288xbf16, #tpu.memory_space<vmem>>, vector<1x16x288xbf16>
    %70 = vector.shape_cast %69 : vector<1x16x288xbf16> to vector<16x288xbf16>
    %71 = vector.shape_cast %68 : vector<16x288xbf16> to vector<1x16x288xbf16>
    tpu.vector_store %arg4[%c1_86, %c0_87, %c0_88], %71 {strides = array<i32>} : memref<2x16x288xbf16, #tpu.memory_space<vmem>>, vector<1x16x288xbf16>,
    return
  }
  func.func @transform_0(%arg0: i32) -> (i32, i32, i32) {
    %c0_i32 = arith.constant 0 : i32
    %c0_i32_0 = arith.constant 0 : i32
    %c0_i32_1 = arith.constant 0 : i32
    return %arg0, %c0_i32, %c0_i32_0 : i32, i32, i32
  }
  func.func @transform_1(%arg0: i32) -> (i32, i32) {
    %c0_i32 = arith.constant 0 : i32
    %c0_i32_0 = arith.constant 0 : i32
    %c0_i32_1 = arith.constant 0 : i32
    return %c0_i32, %c0_i32_0 : i32, i32
  }
  func.func @transform_2(%arg0: i32) -> (i32, i32) {
    %c0_i32 = arith.constant 0 : i32
    %c0_i32_0 = arith.constant 0 : i32
    %c0_i32_1 = arith.constant 0 : i32
    return %c0_i32, %c0_i32_0 : i32, i32
  }
  func.func @transform_3(%arg0: i32) -> (i32, i32, i32) {
    %c0_i32 = arith.constant 0 : i32
    %c0_i32_0 = arith.constant 0 : i32
    %c0_i32_1 = arith.constant 0 : i32
    return %arg0, %c0_i32, %c0_i32_0 : i32, i32, i32
  }
}

</mosaic_0001>

<bundles_post_ra>
// kernel: tpu_custom_call.1
= control target key start
LH: loop header
LB: loop body
LE: loop exit
PB: predicated region body
PF: predicated region fallthrough
CT: control target
= control target key end

     0   :  { %8 = vsyncpa [#allocation4], 0  ;;  %s1364_s0 = inlined_call_operand.vmem [shape: bf16[2,4,384], index: 0, kind: input, shape index: {}]   ;;  %s1365_s1 = inlined_call_operand.hbm [shape: bf16[16,36], index: 1, kind: input, shape index: {}]   ;;  %s1366_s2 = inlined_call_operand.vmem [shape: f32[16,1], index: 2, kind: input, shape index: {}]   ;;  %s1367_s3 = inlined_call_operand.hbm [shape: bf16[2,16,288], index: 3, kind: output, shape index: {}]  }
   0x1   :  { %9 = vsyncpa [#allocation5], 0  ;;  %s1108_s12 = smov [#allocation3]  }
   0x2   :  { %s17_s13 = sshll.u32 %s1108_s12, 4  ;;  %s18_s13 = int_to_ptr.vmem [resolvable:$true] %s17_s13 }
   0x3   :  { %s1072_s14 = scalar_lea.vmem %s18_s13, 128  ;;  %p1077_p1 = scmp.lt.s32.totalorder %s18_s13, %s18_s13 }
   0x4   :  { %p1073_p0 = scmp.ne.s32.totalorder %s18_s13, %s1072_s14  ;;  %p1078_p2 = scmp.lt.s32.totalorder %s1072_s14, %s1072_s14 }
   0x6   :  { %p1079_p3 = por %p1078_p2, %p1077_p1 }
   0x8   :  { %p1080_p4 = pnand %p1079_p3, %p1073_p0 }
   0xa   :  { %1083 = shalt.err (!%p1080_p4)
}
   0xb   :  { %s1109_s15 = smov 64   ;;  %s1110_s16 = smov 4  }
   0xc   :  { %23 = dma.hbm_to_vmem [thread:$0]  %s1365_s1, 128, %s18_s13, [#allocation4], %s1109_s15, %s1109_s15, %s1110_s16  }
   0xd   :  { %1104 = dma.done.wait [#allocation4], 128  }
   0xe   :  { %1105 = vsyncadd [#allocation4], 4294967168  ;;  %v47_v0 = vlaneseq  ;;  %v1111_v1 = vmov 1983009808   ;;  %v268_v6 = vld [vmem:[%s1364_s0] sm:$0x3f] }
   0xf   :  { %v45_v2 = vunpack.c.l.s4 %v1111_v1  ;;  %v148_v7 = vld [vmem:[%s1364_s0] sm:$0x3f]  ;;  %v270_v12 = vcombine.high %v268_v6, %v268_v6  ;;  %s1112_s26 = smov 90   ;;  %s1113_s27 = smov 109   ;;  %v1116_v26 = vmov 0.0   ;;  %vm54_vm0 = vcmask 254976  }
  0x10   :  { %v48_v3 = vshrl.u32 %v47_v0, 7  ;;  %v208_v8 = vld [vmem:[%s1364_s0] sm:$0x3f]  ;;  %v150_v13 = vcombine.high %v148_v7, %v148_v7  ;;  %s1114_s30 = smov 92   ;;  %s1115_s4 = smov 108   ;;  %985 = vmatprep.subr.bf16.mxu1 %v1116_v26  ;;  %vm1121_vm1 = vmmov 0  }
  0x11   :  { %v46_v4 = vunpack.c.0.s8 %v45_v2  ;;  %v178_v11 = vld [vmem:[%s1364_s0] sm:$0x3f]  ;;  %v210_v20 = vcombine.high %v208_v8, %v208_v8  ;;  %s1117_s11 = smov 91   ;;  %s1118_s14 = smov 127   ;;  %v952_v40 = vld [vmem:[%s1364_s0 + $0x6] sm:$0x3f]  ;;  %991 = vmatprep.mubr.msk.bf16.mxu1 %vm1121_vm1, %v1116_v26 }
  0x12   :  { %v180_v16 = vcombine.low %v178_v11, %v178_v11  ;;  %v34_v17 = vld [vmem:[%s1364_s0] sm:$0x3f]  ;;  %s1119_s17 = smov 126   ;;  %v713_v43 = vcombine.high %v952_v40, %v952_v40  ;;  %v948_v44 = vld [vmem:[%s1364_s0 + $0x6] sm:$0x3f]  ;;  %s1120_s20 = smov 110  }
  0x13   :  { %v1149_v5 = vsub.s32 %v46_v4, %v48_v3  ;;  %925 = vst.sshfl [vmem:[#allocation2] sm:$0xf pattern:$0x76325410] %v34_v17  ;;  %v238_v21 = vld [vmem:[%s1364_s0] sm:$0x3f]  ;;  %v36_v27 = vcombine.high %v34_v17, %v34_v17  ;;  %v597_v47 = vcombine.high %v948_v44, %v948_v44 }
  0x14   :  { %v240_v24 = vcombine.low %v238_v21, %v238_v21  ;;  %v56_v25 = vld [vmem:[%s1364_s0] sm:$0x3f]  ;;  %v949_v48 = vld [vmem:[%s1364_s0 + $0x6] sm:$0x3f]  ;;  %v1122_v53 = vmov 0   ;;  %vm86_vm2 = vcmask 257026  }
  0x15   :  { %v277_v9 = vrot.slane %v268_v6, %v1149_v5  ;;  %v157_v10 = vrot.slane %v148_v7, %v1149_v5  ;;  %v217_v14 = vrot.slane %v208_v8, %v1149_v5  ;;  %v194_v15 = vrot.slane %v178_v11, %v1149_v5  ;;  %v88_v31 = vld [vmem:[%s1364_s0] sm:$0x3f]  ;;  %v950_v52 = vld [vmem:[%s1364_s0 + $0x6] sm:$0x3f]  ;;  %409 = vmatprep.mubr.bf16.mxu0 %v1122_v53 }
  0x16   :  { %v284_v18 = vrot.slane %v270_v12, %v1149_v5  ;;  %v164_v19 = vrot.slane %v150_v13, %v1149_v5  ;;  %v187_v22 = vrot.slane %v180_v16, %v1149_v5  ;;  %v224_v23 = vrot.slane %v210_v20, %v1149_v5  ;;  %v118_v36 = vld [vmem:[%s1364_s0] sm:$0x3f]  ;;  %1024 = vset.pattern.permute.xlu1 %v1122_v53  ;;  %v951_v57 = vld [vmem:[%s1364_s0 + $0x6] sm:$0x3f] }
  0x17   :  { %285 = vrot.lane.b32.xlu0 %v277_v9, %s1112_s26  ;;  %165 = vrot.lane.b32.xlu1 %v157_v10, %s1113_s27  ;;  %v247_v28 = vrot.slane %v240_v24, %v1149_v5  ;;  %v254_v29 = vrot.slane %v238_v21, %v1149_v5  ;;  %v58_v30 = vcombine.low %v56_v25, %v56_v25  ;;  %v945_v61 = vld [vmem:[%s1364_s0 + $0x6] sm:$0x3f]  ;;  %vm79_vm3 = vcmask 1043456  }
  0x18   :  { %v50_v32 = vrot.slane %v36_v27, %v1149_v5  ;;  %v72_v33 = vrot.slane %v56_v25, %v1149_v5  ;;  %v90_v35 = vcombine.high %v88_v31, %v88_v31  ;;  %v97_v38 = vrot.slane %v88_v31, %v1149_v5  ;;  %1023 = vset.pattern.permute.xlu0 %v1122_v53  ;;  %v946_v1 = vld [vmem:[%s1364_s0 + $0x6] sm:$0x3f] }
  0x19   :  { %v65_v34 = vrot.slane %v58_v30, %v1149_v5  ;;  %v120_v39 = vcombine.low %v118_v36, %v118_v36  ;;  %v134_v41 = vrot.slane %v118_v36, %v1149_v5  ;;  %v727_v45 = vrot.slane %v713_v43, %v1149_v5  ;;  %v947_v6 = vld [vmem:[%s1364_s0 + $0x6] sm:$0x3f] }
  0x1a   :  { %55 = vst.msk [vmem:[#allocation2 + $0x8] sm:$0x3] %vm54_vm0, %v50_v32  ;;  %v104_v37 = vrot.slane %v90_v35, %v1149_v5  ;;  %v720_v46 = vrot.slane %v952_v40, %v1149_v5  ;;  %v611_v49 = vrot.slane %v597_v47, %v1149_v5  ;;  %v604_v50 = vrot.slane %v948_v44, %v1149_v5  ;;  %v33_v12 = vld [vmem:[%s1366_s2 + $0x8] sm:$0xff]  ;;  %v32_v13 = vld [vmem:[%s1366_s2] sm:$0xff] }
  0x1b   :  { %225 = vrot.lane.b32.xlu0 %v217_v14, %s1114_s30  ;;  %197 = vrot.lane.b32.xlu1 %v194_v15, %s1115_s4  ;;  %v127_v42 = vrot.slane %v120_v39, %v1149_v5  ;;  %v626_v51 = vcombine.low %v949_v48, %v949_v48  ;;  %v640_v54 = vrot.slane %v949_v48, %v1149_v5  ;;  %vm292_vm4 = vcmask 736256  }
  0x1c   :  { %v655_v56 = vcombine.high %v950_v52, %v950_v52  ;;  %v662_v59 = vrot.slane %v950_v52, %v1149_v5  ;;  %v684_v60 = vcombine.low %v951_v57, %v951_v57  ;;  %v698_v62 = vrot.slane %v951_v57, %v1149_v5 }
  0x1d   :  { %v633_v55 = vrot.slane %v626_v51, %v1149_v5  ;;  %v510_v0 = vcombine.low %v945_v61, %v945_v61  ;;  %v524_v2 = vrot.slane %v945_v61, %v1149_v5  ;;  %v539_v4 = vcombine.high %v946_v1, %v946_v1 }
  0x1e   :  { %v669_v58 = vrot.slane %v655_v56, %v1149_v5  ;;  %v691_v63 = vrot.slane %v684_v60, %v1149_v5  ;;  %v546_v8 = vrot.slane %v946_v1, %v1149_v5  ;;  %v568_v9 = vcombine.low %v947_v6, %v947_v6 }
  0x1f   :  { %287 = vrot.lane.b32.xlu0 %v284_v18, %s1112_s26  ;;  %167 = vrot.lane.b32.xlu1 %v164_v19, %s1113_s27  ;;  %v517_v3 = vrot.slane %v510_v0, %v1149_v5  ;;  %v553_v7 = vrot.slane %v539_v4, %v1149_v5  ;;  %v582_v10 = vrot.slane %v947_v6, %v1149_v5  ;;  %vm172_vm5 = vcmask 891904  }
  0x20   :  { %v575_v11 = vrot.slane %v568_v9, %v1149_v5  ;;  %vm202_vm6 = vcmask 883712   ;;  %vm232_vm7 = vcmask 752640   ;;  %vm367_vm8 = vcmask 1041408  }
  0x21   :  { %vm262_vm9 = vcmask 744448   ;;  %vm81_vm10 = vcmask 1039360   ;;  %vm112_vm11 = vcmask 1031168   ;;  %vm142_vm12 = vcmask 900096  }
  0x22   :  { %vm363_vm13 = vcmask 293888   ;;  %vm482_vm14 = vcmask 257024  }
  0x23   :  { %195 = vrot.lane.b32.xlu0 %v187_v22, %s1115_s4  ;;  %227 = vrot.lane.b32.xlu1 %v224_v23, %s1114_s30 }
  0x27   :  { %255 = vrot.lane.b32.xlu0 %v247_v28, %s1117_s11  ;;  %257 = vrot.lane.b32.xlu1 %v254_v29, %s1117_s11 }
  0x2b   :  { %75 = vrot.lane.b32.xlu1 %v72_v33, %s1118_s14  ;;  %73 = vrot.lane.b32.xlu0 %v65_v34, %s1118_s14 }
  0x2f   :  { %107 = vrot.lane.b32.xlu1 %v104_v37, %s1119_s17  ;;  %105 = vrot.lane.b32.xlu0 %v97_v38, %s1119_s17 }
  0x33   :  { %137 = vrot.lane.b32.xlu1 %v134_v41, %s1120_s20  ;;  %135 = vrot.lane.b32.xlu0 %v127_v42, %s1120_s20 }
  0x37   :  { %730 = vrot.lane.b32.xlu1 %v727_v45, %s1112_s26  ;;  %728 = vrot.lane.b32.xlu0 %v720_v46, %s1112_s26 }
  0x3b   :  { %614 = vrot.lane.b32.xlu1 %v611_v49, %s1113_s27  ;;  %612 = vrot.lane.b32.xlu0 %v604_v50, %s1113_s27 }
  0x3f   :  { %643 = vrot.lane.b32.xlu1 %v640_v54, %s1115_s4  ;;  %641 = vrot.lane.b32.xlu0 %v633_v55, %s1115_s4 }
  0x43   :  { %672 = vrot.lane.b32.xlu1 %v669_v58, %s1114_s30  ;;  %670 = vrot.lane.b32.xlu0 %v662_v59, %s1114_s30 }
  0x47   :  { %701 = vrot.lane.b32.xlu1 %v698_v62, %s1117_s11  ;;  %699 = vrot.lane.b32.xlu0 %v691_v63, %s1117_s11  ;;  %v943_v63 = vld [vmem:[%s1364_s0 + $0x6] sm:$0x3f]  ;;  %s1123_s0 = smov [#allocation6]  }
  0x48   :  { %v489_v9 = vcombine.high %v943_v63, %v943_v63  ;;  %s913_s10 = sshll.u32 %s1123_s0, 4  ;;  %s914_s10 = int_to_ptr.vmem [resolvable:$true] %s913_s10 }
  0x49   :  { %s1084_s11 = scalar_lea.vmem %s914_s10, 768  ;;  %p1089_p6 = scmp.lt.s32.totalorder %s914_s10, %s914_s10 }
  0x4a   :  { %p1085_p5 = scmp.ne.s32.totalorder %s914_s10, %s1084_s11  ;;  %p1090_p7 = scmp.lt.s32.totalorder %s1084_s11, %s1084_s11 }
  0x4b   :  { %527 = vrot.lane.b32.xlu1 %v524_v2, %s1118_s14  ;;  %525 = vrot.lane.b32.xlu0 %v517_v3, %s1118_s14 }
  0x4c   :  { %p1091_p8 = por %p1090_p7, %p1089_p6 }
  0x4e   :  { %p1092_p9 = pnand %p1091_p8, %p1085_p5 }
  0x4f   :  { %556 = vrot.lane.b32.xlu1 %v553_v7, %s1119_s17  ;;  %554 = vrot.lane.b32.xlu0 %v546_v8, %s1119_s17 }
  0x53   :  { %585 = vrot.lane.b32.xlu1 %v582_v10, %s1120_s20  ;;  %583 = vrot.lane.b32.xlu0 %v575_v11, %s1120_s20 }
  0x57   :  { %315 = vperm.xlu1 %1024, %v33_v12   ;;  %310 = vperm.xlu0 %1023, %v32_v13  }
  0x89   :  { %v286_v14 = vpop.permute.xlu0 %285  ;;  %v166_v15 = vpop.permute.xlu1 %165 }
  0x8a   :  { %v289_v20 = vrot.slane %v286_v14, 4  ;;  %v169_v21 = vrot.slane %v166_v15, 4 }
  0x8d   :  { %v226_v16 = vpop.permute.xlu0 %225  ;;  %v198_v17 = vpop.permute.xlu1 %197 }
  0x8e   :  { %207 = vst.msk [vmem:[#allocation2 + $0x20] sm:$0xc] %vm86_vm2, %v198_v17  ;;  %v229_v31 = vrot.slane %v226_v16, 4  ;;  %v200_v32 = vrot.slane %v198_v17, 4 }
  0x91   :  { %v288_v18 = vpop.permute.xlu0 %287  ;;  %v168_v19 = vpop.permute.xlu1 %167 }
  0x92   :  { %v290_v22 = vrot.slane %v288_v18, 4  ;;  %297 = vst.msk [vmem:[#allocation2 + $0x38] sm:$0x3] %vm54_vm0, %v288_v18  ;;  %v170_v23 = vrot.slane %v168_v19, 4  ;;  %177 = vst.msk [vmem:[#allocation2 + $0x20] sm:$0x3] %vm54_vm0, %v168_v19 }
  0x94   :  { %v291_v24 = vsel %vm79_vm3, %v289_v20, %v290_v22  ;;  %v171_v25 = vsel %vm79_vm3, %v169_v21, %v170_v23 }
  0x95   :  { %v293_v27 = vsel %vm292_vm4, %v286_v14, %v291_v24  ;;  %v173_v28 = vsel %vm172_vm5, %v166_v15, %v171_v25  ;;  %v196_v29 = vpop.permute.xlu0 %195  ;;  %v228_v30 = vpop.permute.xlu1 %227  ;;  %v1318_v24 = vld [vmem:[#allocation3] sm:$0xff]  }
  0x96   :  { %296 = vst [vmem:[#allocation2 + $0x30] sm:$0x33] %v293_v27  ;;  %176 = vst [vmem:[#allocation2 + $0x18] sm:$0x33] %v173_v28  ;;  %v199_v33 = vrot.slane %v196_v29, 4  ;;  %v230_v34 = vrot.slane %v228_v30, 4 }
  0x97   :  { %237 = vst.msk [vmem:[#allocation2 + $0x2c] sm:$0x3] %vm54_vm0, %v228_v30 }
  0x98   :  { %v201_v35 = vsel %vm79_vm3, %v199_v33, %v200_v32  ;;  %v231_v36 = vsel %vm79_vm3, %v229_v31, %v230_v34 }
  0x99   :  { %v203_v37 = vsel %vm202_vm6, %v196_v29, %v201_v35  ;;  %v233_v38 = vsel %vm232_vm7, %v226_v16, %v231_v36  ;;  %v256_v39 = vpop.permute.xlu0 %255  ;;  %v258_v40 = vpop.permute.xlu1 %257  ;;  %v1041_v41 = vld [vmem:[#allocation2 + $0x38] ss:$0 sps:$4 sm:$0x33]   ;;  %v503_v16 = vrot.slane %v489_v9, %v1149_v5 }
  0x9a   :  { %206 = vst [vmem:[#allocation2 + $0x18] sm:$0xcc] %v203_v37  ;;  %236 = vst [vmem:[#allocation2 + $0x24] sm:$0x33] %v233_v38  ;;  %v259_v42 = vrot.slane %v256_v39, 4  ;;  %v260_v43 = vrot.slane %v258_v40, 4 }
  0x9b   :  { %267 = vst.msk [vmem:[#allocation2 + $0x2c] sm:$0xc] %vm86_vm2, %v258_v40  ;;  %v375_v44 = vsel %vm367_vm8, %v1041_v41, 0 }
  0x9c   :  { %v261_v45 = vsel %vm79_vm3, %v259_v42, %v260_v43  ;;  %986 = vmatpush3.bf16.msra.mxu1 %v375_v44 }
  0x9d   :  { %v263_v46 = vsel %vm262_vm9, %v256_v39, %v261_v45  ;;  %v76_v47 = vpop.permute.xlu1 %75  ;;  %v74_v48 = vpop.permute.xlu0 %73  ;;  %v306_v49 = vld [vmem:[#allocation2 + $0x30] sm:$0x33]  ;;  %987 = vmatprep.subr.bf16.mxu1 %v1116_v26 }
  0x9e   :  { %266 = vst [vmem:[#allocation2 + $0x24] sm:$0xcc] %v263_v46  ;;  %v78_v50 = vrot.slane %v76_v47, 4  ;;  %87 = vst.msk [vmem:[#allocation2 + $0x8] sm:$0xc] %vm86_vm2, %v76_v47  ;;  %v77_v51 = vrot.slane %v74_v48, 4  ;;  %v934_v52 = vcombine.high %v306_v49, %v306_v49  ;;  %v933_v54 = vcombine.low %v306_v49, %v306_v49 }
  0xa0   :  { %v80_v55 = vsel %vm79_vm3, %v77_v51, %v78_v50  ;;  %936 = vmatprep.subr.msk.bf16.mxu0 %vm367_vm8, %v934_v52  ;;  %v369_v56 = vsel %vm367_vm8, %v933_v54, 0 }
  0xa1   :  { %v82_v57 = vsel %vm81_vm10, %v74_v48, %v80_v55  ;;  %388 = vmatpush1.bf16.msra.mxu0 %v369_v56  ;;  %v108_v58 = vpop.permute.xlu1 %107  ;;  %v106_v59 = vpop.permute.xlu0 %105 }
  0xa2   :  { %v1044_v60 = vld [vmem:[#allocation2 + $0x20] ss:$12 sps:$4 sm:$0xff]   ;;  %85 = vst [vmem:[#allocation2] sm:$0xcc] %v82_v57  ;;  %v110_v61 = vrot.slane %v108_v58, 4  ;;  %v109_v62 = vrot.slane %v106_v59, 4 }
  0xa3   :  { %117 = vst.msk [vmem:[#allocation2 + $0x14] sm:$0x3] %vm54_vm0, %v108_v58  ;;  %988 = vmatpush3.bf16.msra.mxu1 %v1044_v60 }
  0xa4   :  { %v111_v0 = vsel %vm79_vm3, %v109_v62, %v110_v61  ;;  %989 = vmatprep.subr.bf16.mxu1 %v1116_v26 }
  0xa5   :  { %v113_v1 = vsel %vm112_vm11, %v106_v59, %v111_v0  ;;  %v138_v2 = vpop.permute.xlu1 %137  ;;  %v136_v3 = vpop.permute.xlu0 %135  ;;  %v1045_v4 = vld [vmem:[#allocation2 + $0x1c] ss:$12 sps:$4 sm:$0xff]   ;;  %v1047_v6 = vld [vmem:[#allocation2 + $0x18] ss:$12 sps:$4 sm:$0xff]  }
  0xa6   :  { %116 = vst [vmem:[#allocation2 + $0xc] sm:$0x33] %v113_v1  ;;  %v140_v7 = vrot.slane %v138_v2, 4  ;;  %147 = vst.msk [vmem:[#allocation2 + $0x14] sm:$0xc] %vm86_vm2, %v138_v2  ;;  %v139_v8 = vrot.slane %v136_v3, 4  ;;  %389 = vmatprep.subr.bf16.mxu0 %v1045_v4 }
  0xa7   :  { %390 = vmatpush1.bf16.msra.mxu0 %v1047_v6 }
  0xa8   :  { %v141_v10 = vsel %vm79_vm3, %v139_v8, %v140_v7 }
  0xa9   :  { %v143_v11 = vsel %vm142_vm12, %v136_v3, %v141_v10  ;;  %v731_v12 = vpop.permute.xlu1 %730  ;;  %v729_v13 = vpop.permute.xlu0 %728  ;;  %v298_v25 = vld [vmem:[#allocation2] sm:$0xff] }
  0xaa   :  { %146 = vst [vmem:[#allocation2 + $0xc] sm:$0xcc] %v143_v11  ;;  %v733_v14 = vrot.slane %v731_v12, 4  ;;  %739 = vst.msk [vmem:[#allocation2 + $0x38] sm:$0x3] %vm54_vm0, %v731_v12  ;;  %v732_v15 = vrot.slane %v729_v13, 4 }
  0xac   :  { %v734_v17 = vsel %vm79_vm3, %v732_v15, %v733_v14 }
  0xad   :  { %v735_v18 = vsel %vm292_vm4, %v729_v13, %v734_v17  ;;  %v615_v19 = vpop.permute.xlu1 %614  ;;  %v613_v20 = vpop.permute.xlu0 %612  ;;  %v1049_v21 = vld [vmem:[#allocation2 + $0x8] ss:$12 sps:$4 sm:$0xff]  }
  0xae   :  { %738 = vst [vmem:[#allocation2 + $0x30] sm:$0x33] %v735_v18  ;;  %v617_v22 = vrot.slane %v615_v19, 4  ;;  %623 = vst.msk [vmem:[#allocation2 + $0x20] sm:$0x3] %vm54_vm0, %v615_v19  ;;  %v616_v23 = vrot.slane %v613_v20, 4  ;;  %990 = vmatpush3.bf16.msra.mxu1 %v1049_v21 }
  0xaf   :  { %507 = vst.msk [vmem:[#allocation2 + $0x8] sm:$0x3] %vm54_vm0, %v503_v16  ;;  %995 = vmatprep.subr.bf16.mxu1 %v1116_v26 }
  0xb0   :  { %v618_v5 = vsel %vm79_vm3, %v616_v23, %v617_v22 }
  0xb1   :  { %v619_v27 = vsel %vm172_vm5, %v613_v20, %v618_v5  ;;  %v644_v28 = vpop.permute.xlu1 %643  ;;  %v642_v29 = vpop.permute.xlu0 %641  ;;  %v300_v30 = vld [vmem:[#allocation2 + $0xc] sm:$0xff]  ;;  %992 = vmatmul.mubr.msk.bf16.vlgmr.msra.gmra.mxu1 %vm363_vm13, %v1318_v24  ;;  %v1054_v35 = vld [vmem:[#allocation2 + $0x38] ss:$0 sps:$4 sm:$0x33]  }
  0xb2   :  { %v1051_v31 = vld [vmem:[#allocation2 + $0x4] ss:$12 sps:$4 sm:$0xff]   ;;  %622 = vst [vmem:[#allocation2 + $0x18] sm:$0x33] %v619_v27  ;;  %v646_v32 = vrot.slane %v644_v28, 4  ;;  %v645_v33 = vrot.slane %v642_v29, 4  ;;  %v927_v34 = vcombine.low %v298_v25, %v300_v30  ;;  %1001 = vmatprep.mubr.msk.bf16.mxu1 %vm1121_vm1, %v1116_v26 }
  0xb3   :  { %652 = vst.msk [vmem:[#allocation2 + $0x20] sm:$0xc] %vm86_vm2, %v644_v28  ;;  %944 = vst.sshfl [vmem:[#allocation2] sm:$0xf pattern:$0x76325410] %v943_v63  ;;  %391 = vmatprep.subr.bf16.mxu0 %v1051_v31 }
  0xb4   :  { %v647_v36 = vsel %vm79_vm3, %v645_v33, %v646_v32  ;;  %392 = vmatpush1.bf16.msra.mxu0 %v927_v34  ;;  %v797_v37 = vsel %vm367_vm8, %v1054_v35, 0 }
  0xb5   :  { %v648_v38 = vsel %vm202_vm6, %v642_v29, %v647_v36  ;;  %v673_v39 = vpop.permute.xlu1 %672  ;;  %v671_v40 = vpop.permute.xlu0 %670  ;;  %996 = vmatpush3.bf16.msra.mxu1 %v797_v37  ;;  %v748_v41 = vld [vmem:[#allocation2 + $0x30] sm:$0x33] }
  0xb6   :  { %651 = vst [vmem:[#allocation2 + $0x18] sm:$0xcc] %v648_v38  ;;  %v675_v42 = vrot.slane %v673_v39, 4  ;;  %681 = vst.msk [vmem:[#allocation2 + $0x2c] sm:$0x3] %vm54_vm0, %v673_v39  ;;  %v674_v43 = vrot.slane %v671_v40, 4  ;;  %v960_v44 = vcombine.high %v748_v41, %v748_v41  ;;  %v959_v45 = vcombine.low %v748_v41, %v748_v41  ;;  %997 = vmatprep.subr.bf16.mxu1 %v1116_v26 }
  0xb7   :  { %937 = vmatmul.mubr.msk.bf16.vlgmr.msra.gmra.mxu0 %vm363_vm13, %v1318_v24 }
  0xb8   :  { %v676_v46 = vsel %vm79_vm3, %v674_v43, %v675_v42  ;;  %962 = vmatprep.subr.msk.bf16.mxu0 %vm367_vm8, %v960_v44  ;;  %v791_v47 = vsel %vm367_vm8, %v959_v45, 0  ;;  %831 = vmatprep.mubr.bf16.mxu0 %v1122_v53 }
  0xb9   :  { %v677_v48 = vsel %vm232_vm7, %v671_v40, %v676_v46  ;;  %v702_v49 = vpop.permute.xlu1 %701  ;;  %v700_v50 = vpop.permute.xlu0 %699  ;;  %810 = vmatpush1.bf16.msra.mxu0 %v791_v47 }
  0xba   :  { %680 = vst [vmem:[#allocation2 + $0x24] sm:$0x33] %v677_v48  ;;  %v704_v51 = vrot.slane %v702_v49, 4  ;;  %710 = vst.msk [vmem:[#allocation2 + $0x2c] sm:$0xc] %vm86_vm2, %v702_v49  ;;  %v703_v52 = vrot.slane %v700_v50, 4 }
  0xbc   :  { %v705_v54 = vsel %vm79_vm3, %v703_v52, %v704_v51 }
  0xbd   :  { %v706_v55 = vsel %vm262_vm9, %v700_v50, %v705_v54  ;;  %v528_v56 = vpop.permute.xlu1 %527  ;;  %v526_v57 = vpop.permute.xlu0 %525 }
  0xbe   :  { %709 = vst [vmem:[#allocation2 + $0x24] sm:$0xcc] %v706_v55  ;;  %v530_v58 = vrot.slane %v528_v56, 4  ;;  %536 = vst.msk [vmem:[#allocation2 + $0x8] sm:$0xc] %vm86_vm2, %v528_v56  ;;  %v529_v53 = vrot.slane %v526_v57, 4 }
  0xc0   :  { %v531_v59 = vsel %vm79_vm3, %v529_v53, %v530_v58 }
  0xc1   :  { %v532_v60 = vsel %vm81_vm10, %v526_v57, %v531_v59  ;;  %v557_v61 = vpop.permute.xlu1 %556  ;;  %v555_v62 = vpop.permute.xlu0 %554  ;;  %v1056_v63 = vld [vmem:[#allocation2 + $0x20] ss:$12 sps:$4 sm:$0xff]  }
  0xc2   :  { %535 = vst [vmem:[#allocation2] sm:$0xcc] %v532_v60  ;;  %v559_v0 = vrot.slane %v557_v61, 4  ;;  %565 = vst.msk [vmem:[#allocation2 + $0x14] sm:$0x3] %vm54_vm0, %v557_v61  ;;  %v558_v1 = vrot.slane %v555_v62, 4  ;;  %998 = vmatpush3.bf16.msra.mxu1 %v1056_v63 }
  0xc3   :  { %999 = vmatprep.subr.bf16.mxu1 %v1116_v26 }
  0xc4   :  { %v560_v2 = vsel %vm79_vm3, %v558_v1, %v559_v0 }
  0xc5   :  { %v561_v3 = vsel %vm112_vm11, %v555_v62, %v560_v2  ;;  %v586_v4 = vpop.permute.xlu1 %585  ;;  %v584_v6 = vpop.permute.xlu0 %583  ;;  %v1057_v7 = vld [vmem:[#allocation2 + $0x18] ss:$12 sps:$4 sm:$0xff]   ;;  %v1059_v8 = vld [vmem:[#allocation2 + $0x1c] ss:$12 sps:$4 sm:$0xff]  }
  0xc6   :  { %564 = vst [vmem:[#allocation2 + $0xc] sm:$0x33] %v561_v3  ;;  %v588_v9 = vrot.slane %v586_v4, 4  ;;  %594 = vst.msk [vmem:[#allocation2 + $0x14] sm:$0xc] %vm86_vm2, %v586_v4  ;;  %v587_v10 = vrot.slane %v584_v6, 4  ;;  %811 = vmatprep.subr.bf16.mxu0 %v1059_v8 }
  0xc7   :  { %812 = vmatpush1.bf16.msra.mxu0 %v1057_v7 }
  0xc8   :  { %v589_v11 = vsel %vm79_vm3, %v587_v10, %v588_v9 }
  0xc9   :  { %v590_v12 = vsel %vm142_vm12, %v584_v6, %v589_v11 }
  0xca   :  { %593 = vst [vmem:[#allocation2 + $0xc] sm:$0xcc] %v590_v12 }
  0xcd   :  { %v1060_v13 = vld [vmem:[#allocation2 + $0x8] ss:$12 sps:$4 sm:$0xff]  }
  0xce   :  { %1000 = vmatpush3.bf16.msra.mxu1 %v1060_v13 }
  0xd1   :  { %v1061_v26 = vld [vmem:[#allocation2] ss:$12 sps:$4 sm:$0xff]   ;;  %v1063_v14 = vld [vmem:[#allocation2 + $0x4] ss:$12 sps:$4 sm:$0xff]   ;;  %1002 = vmatmul.mubr.msk.bf16.vlgmr.msra.gmra.mxu1 %vm363_vm13, %v1318_v24 }
  0xd2   :  { %813 = vmatprep.subr.bf16.mxu0 %v1063_v14  ;;  %v311_v16 = vpop.permute.xlu0 %310  ;;  %v316_v20 = vpop.permute.xlu1 %315 }
  0xd3   :  { %814 = vmatpush1.bf16.msra.mxu0 %v1061_v26 }
  0xd6   :  { %963 = vmatmul.mubr.msk.bf16.vlgmr.msra.gmra.mxu0 %vm363_vm13, %v1318_v24 }
 0x171   :  { %v454_v15 = vpop.f32.mrf.mxu1 }
 0x172   :  { %v455_v17 = vadd.f32 %v454_v15, %v311_v16 }
 0x173   :  { %v993_v18 = vpop.f32.mrf.mxu1 }
 0x174   :  { %v970_v19 = vpack.c.bf16 %v455_v17, %v455_v17 }
 0x175   :  { %v457_v21 = vpop.f32.mrf.mxu1 }
 0x176   :  { %v458_v23 = vadd.f32 %v457_v21, %v316_v20  ;;  %483 = vst.msk [vmem:[#allocation6 + $0x8] sm:$0xf] %vm482_vm14, %v970_v19 }
 0x177   :  { %v411_v22 = vpop.f32.mrf.mxu0  ;;  %v994_v25 = vpop.f32.mrf.mxu1 }
 0x178   :  { %v412_v5 = vadd.f32 %v411_v22, %v311_v16  ;;  %v972_v28 = vpack.c.bf16 %v458_v23, %v458_v23 }
 0x179   :  { %v413_v27 = vpop.f32.mrf.mxu0 }
 0x17a   :  { %v414_v29 = vadd.f32 %v413_v27, %v311_v16  ;;  %485 = vst.msk [vmem:[#allocation6 + $0x14] sm:$0xf] %vm482_vm14, %v972_v28 }
 0x17b   :  { %v415_v30 = vpop.f32.mrf.mxu0 }
 0x17c   :  { %v969_v24 = vpack.c.bf16 %v414_v29, %v412_v5  ;;  %v416_v31 = vadd.f32 %v415_v30, %v316_v20 }
 0x17d   :  { %v417_v32 = vpop.f32.mrf.mxu0 }
 0x17e   :  { %481 = vst [vmem:[#allocation6] sm:$0xff] %v969_v24  ;;  %v418_v33 = vadd.f32 %v417_v32, %v316_v20 }
 0x180   :  { %v971_v34 = vpack.c.bf16 %v418_v33, %v416_v31 }
 0x182   :  { %484 = vst [vmem:[#allocation6 + $0xc] sm:$0xff] %v971_v34 }
 0x191   :  { %v876_v35 = vpop.f32.mrf.mxu1 }
 0x192   :  { %v877_v36 = vadd.f32 %v876_v35, %v311_v16 }
 0x193   :  { %v1003_v37 = vpop.f32.mrf.mxu1 }
 0x194   :  { %v974_v38 = vpack.c.bf16 %v877_v36, %v877_v36 }
 0x195   :  { %v879_v39 = vpop.f32.mrf.mxu1 }
 0x196   :  { %905 = vst.msk [vmem:[#allocation6 + $0x20] sm:$0xf] %vm482_vm14, %v974_v38  ;;  %v833_v40 = vpop.f32.mrf.mxu0  ;;  %v880_v41 = vadd.f32 %v879_v39, %v316_v20 }
 0x197   :  { %v1004_v42 = vpop.f32.mrf.mxu1  ;;  %v834_v45 = vadd.f32 %v833_v40, %v311_v16 }
 0x198   :  { %v976_v43 = vpack.c.bf16 %v880_v41, %v880_v41  ;;  %v835_v44 = vpop.f32.mrf.mxu0 }
 0x199   :  { %v836_v46 = vadd.f32 %v835_v44, %v311_v16 }
 0x19a   :  { %907 = vst.msk [vmem:[#allocation6 + $0x2c] sm:$0xf] %vm482_vm14, %v976_v43  ;;  %v837_v47 = vpop.f32.mrf.mxu0 }
 0x19b   :  { %v973_v48 = vpack.c.bf16 %v836_v46, %v834_v45  ;;  %v838_v50 = vadd.f32 %v837_v47, %v316_v20 }
 0x19c   :  { %v839_v49 = vpop.f32.mrf.mxu0 }
 0x19d   :  { %904 = vst [vmem:[#allocation6 + $0x18] sm:$0xff] %v973_v48  ;;  %v840_v51 = vadd.f32 %v839_v49, %v316_v20 }
 0x19f   :  { %v975_v52 = vpack.c.bf16 %v840_v51, %v838_v50 }
 0x1a1   :  { %906 = vst [vmem:[#allocation6 + $0x24] sm:$0xff] %v975_v52 }
 0x1a2   :  { %1095 = shalt.err (!%p1092_p9)
}
 0x1a3   :  { %s1124_s12 = smov 192   ;;  %s1125_s13 = smov 12  }
 0x1a4   :  { %919 = dma.vmem_to_hbm [thread:$0]  %s914_s10, 768, %s1367_s3, [#allocation5], %s1124_s12, %s1124_s12, %s1125_s13  }
 0x1a5   :  { %1106 = dma.done.wait [#allocation5], 768  }
 0x1a6   :  { %1107 = vsyncadd [#allocation5], 4294966528 }
 0x1a7   :  { %923 = vsyncpa [#allocation4], 1 }
 0x1a8   :  { %924 = vsyncpa [#allocation5], 1 }

</bundles_post_ra>
